<compile_context>
chip_gen: v7x
topology: tpu7x:2x2x1
jax: 0.10.0
libtpu: 0.0.40
codegen_flags: <defaults>
</compile_context>

<pallas_src>
import jax
import jax.numpy as jnp
from jax.experimental import pallas as pl
from jax.experimental.pallas import tpu as pltpu


def _diag_filter_kernel(f_ref, x_ref, o_ref):
    # f_ref: (TM, 1), x_ref / o_ref: (TM, TN)
    # Row-scale: mathematically identical to diag(f) @ x.
    o_ref[...] = f_ref[...] * x_ref[...]


def _round_up(v: int, m: int) -> int:
    return ((v + m - 1) // m) * m


def _round_down(v: int, m: int) -> int:
    return (v // m) * m


def _vmem_budget():
    """Returns (double-buffered working-set budget bytes, vmem_limit_bytes or None)."""
    kind = ""
    try:
        kind = jax.devices()[0].device_kind.lower()
    except Exception:
        pass
    if ("v6" in kind) or ("v7" in kind) or ("tpu7" in kind):
        # v6e: 32 MiB scoped default (128 MiB physical).
        # v7x: 32 MiB scoped default (64 MiB physical) -> 28 MiB limit is safe.
        return 20 << 20, 28 << 20
    # v5e (16 MiB scoped default) and anything unrecognized: stay conservative.
    return 8 << 20, None


def trainable_diagonal_filter(
    x: jax.Array,
    filt: jax.Array,
    *,
    min_pallas_bytes: int = 4 << 20,
    tile_m: int | None = None,
    tile_n: int | None = None,
) -> jax.Array:
    """Applies y = diag(filt) @ x with a Pallas TPU kernel.

    x:    (size, N)
    filt: (size,)
    """
    size, N = x.shape
    assert filt.shape == (size,)
    filt = filt.astype(x.dtype)  # the module lazily casts the filter to x's dtype

    # Small-problem fallback: pallas_call launch + first-tile DMA fill exceeds
    # the real work for small inputs; XLA emits the same mem-bound row-scale.
    itemsize = x.dtype.itemsize
    if x.size * itemsize < min_pallas_bytes:
        return filt[:, None] * x

    # Sublane alignment for the row dim: 8 (f32), 16 (bf16), 32 (int8/fp8).
    sublane = max(8, 32 // max(itemsize, 1))
    budget, vmem_limit = _vmem_budget()

    tn_full = _round_up(N, 128)
    tm_full = _round_up(size, sublane)

    # Working set (double-buffered):
    #   2*tm*tn*it (x) + 2*tm*tn*it (out) + 2*tm*128*it (lane-padded filter)
    #   = 2*tm*it*(2*tn + 128)
    # Pick tn (lanes, multiple of 128) as wide as the budget allows at tm =
    # sublane, then fill the remaining budget with rows.
    if tile_n is not None:
        tn = tile_n
    else:
        tn_cap = (budget // (2 * sublane * itemsize) - 128) // 2
        tn = min(tn_full, max(128, _round_down(tn_cap, 128)))
    if tile_m is not None:
        tm = tile_m
    else:
        tm_cap = budget // (2 * itemsize * (2 * tn + 128))
        tm = min(tm_full, max(sublane, _round_down(tm_cap, sublane)))

    # Ragged grid: no padding of x / filt, no output slice.  Partial edge
    # blocks read garbage out of bounds but their stores are masked, which is
    # safe because the kernel is purely elementwise.
    grid = (pl.cdiv(size, tm), pl.cdiv(N, tn))

    return pl.pallas_call(
        _diag_filter_kernel,
        out_shape=jax.ShapeDtypeStruct((size, N), x.dtype),
        grid_spec=pltpu.PrefetchScalarGridSpec(
            num_scalar_prefetch=0,
            grid=grid,
            in_specs=[
                # Filter rows for this row-tile; constant column index keeps it
                # VMEM-resident across the (innermost) N axis.
                pl.BlockSpec((tm, 1), lambda i, j: (i, 0)),
                # x tile over (rows, lanes).
                pl.BlockSpec((tm, tn), lambda i, j: (i, j)),
            ],
            out_specs=pl.BlockSpec((tm, tn), lambda i, j: (i, j)),
        ),
        compiler_params=pltpu.CompilerParams(
            # Purely elementwise -> both axes independent; lets megacore (v7x)
            # shard the grid across both TensorCores.
            dimension_semantics=("parallel", "parallel"),
            vmem_limit_bytes=vmem_limit,
        ),
    )(filt.reshape(size, 1), x)


if __name__ == "__main__":
    key = jax.random.PRNGKey(0)
    k_f1, k_x1, k_f2, k_x2 = jax.random.split(key, 4)

    # --- Test 1: small lane-aligned shape, force the Pallas path -------------
    size, N = 32, 256
    # Module __init__ uses torch.ones(size); use a deterministic random filter
    # so the test is non-trivial (same shape, deterministic seed).
    filt = jax.random.normal(k_f1, (size,), dtype=jnp.float32)
    x = jax.random.normal(k_x1, (size, N), dtype=jnp.float32)

    y = jax.block_until_ready(trainable_diagonal_filter(x, filt, min_pallas_bytes=0))
    y_ref = jnp.diag(filt) @ x
    assert y.shape == y_ref.shape and y.dtype == y_ref.dtype
    assert jnp.allclose(y, y_ref, atol=1e-5, rtol=1e-5)

    # --- Test 2: non-aligned shape, multi-block ragged grid ------------------
    # Small tile overrides force grid=(3,3) with masked edge blocks.
    size2, N2 = 130, 300
    filt2 = jax.random.normal(k_f2, (size2,), dtype=jnp.float32)
    x2 = jax.random.normal(k_x2, (size2, N2), dtype=jnp.float32)

    y2 = jax.block_until_ready(
        trainable_diagonal_filter(x2, filt2, min_pallas_bytes=0, tile_m=64, tile_n=128)
    )
    y2_ref = jnp.diag(filt2) @ x2
    assert y2.shape == y2_ref.shape and y2.dtype == y2_ref.dtype
    assert jnp.allclose(y2, y2_ref, atol=1e-5, rtol=1e-5)

    # --- Test 2b: non-aligned shape, auto-tiled (single ragged block) --------
    y2b = jax.block_until_ready(trainable_diagonal_filter(x2, filt2, min_pallas_bytes=0))
    assert jnp.allclose(y2b, y2_ref, atol=1e-5, rtol=1e-5)

    # --- Test 3: default small-shape fallback matches too --------------------
    y3 = jax.block_until_ready(trainable_diagonal_filter(x, filt))
    assert jnp.allclose(y3, y_ref, atol=1e-5, rtol=1e-5)

    print("KERNEL_OK")
</pallas_src>

<mosaic_0001>
module attributes {stable_mosaic.version = 11 : i64} {
  func.func @_diag_filter_kernel(%arg0: i32, %arg1: i32, %arg2: memref<32x1xf32, #tpu.memory_space<vmem>>, %arg3: memref<32x256xf32, #tpu.memory_space<vmem>>, %arg4: memref<32x256xf32, #tpu.memory_space<vmem>>) attributes {dimension_semantics = [#tpu.dimension_semantics<parallel>, #tpu.dimension_semantics<parallel>], iteration_bounds = array<i64: 1, 1>, scalar_prefetch = 0 : i64, scratch_operands = 0 : i64, tpu.core_type = #tpu.core_type<tc>, window_params = [{transform_indices = @transform_0, window_bounds = array<i64: 32, 1>}, {transform_indices = @transform_1, window_bounds = array<i64: 32, 256>}, {transform_indices = @transform_2, window_bounds = array<i64: 32, 256>}]} {
    %c0 = arith.constant 0 : index
    %c0_0 = arith.constant 0 : index
    %0 = vector.load %arg2[%c0, %c0_0] : memref<32x1xf32, #tpu.memory_space<vmem>>, vector<32x1xf32>
    %c0_1 = arith.constant 0 : index
    %c0_2 = arith.constant 0 : index
    %1 = vector.load %arg3[%c0_1, %c0_2] : memref<32x256xf32, #tpu.memory_space<vmem>>, vector<32x256xf32>
    %2 = vector.broadcast %0 : vector<32x1xf32> to vector<32x256xf32>
    %3 = arith.mulf %2, %1 : vector<32x256xf32>
    %c0_3 = arith.constant 0 : index
    %c0_4 = arith.constant 0 : index
    %4 = vector.load %arg4[%c0_3, %c0_4] : memref<32x256xf32, #tpu.memory_space<vmem>>, vector<32x256xf32>
    tpu.vector_store %arg4[%c0_3, %c0_4], %3 {strides = array<i32>} : memref<32x256xf32, #tpu.memory_space<vmem>>, vector<32x256xf32>,
    return
  }
  func.func @transform_0(%arg0: i32, %arg1: i32) -> (i32, i32) {
    %c0_i32 = arith.constant 0 : i32
    %c0_i32_0 = arith.constant 0 : i32
    return %arg0, %c0_i32 : i32, i32
  }
  func.func @transform_1(%arg0: i32, %arg1: i32) -> (i32, i32) {
    %c0_i32 = arith.constant 0 : i32
    return %arg0, %arg1 : i32, i32
  }
  func.func @transform_2(%arg0: i32, %arg1: i32) -> (i32, i32) {
    %c0_i32 = arith.constant 0 : i32
    return %arg0, %arg1 : i32, i32
  }
}

</mosaic_0001>

<bundles_post_ra>
// kernel: tpu_custom_call.1
= control target key start
LH: loop header
LB: loop body
LE: loop exit
PB: predicated region body
PF: predicated region fallthrough
CT: control target
= control target key end

     0   :  { %7 = vsyncpa [#allocation3], 0  ;;  %s208_s0 = inlined_call_operand.vmem [shape: f32[32,1], index: 0, kind: input, shape index: {}]   ;;  %s209_s1 = inlined_call_operand.hbm [shape: f32[32,256], index: 1, kind: input, shape index: {}]   ;;  %s210_s2 = inlined_call_operand.hbm [shape: f32[32,256], index: 2, kind: output, shape index: {}]  }
   0x1   :  { %8 = vsyncpa [#allocation4], 0  ;;  %s146_s9 = smov [#allocation2]   ;;  %s98_s13 = scalar_lea.hbm %s209_s1, 1024 }
   0x2   :  { %s16_s10 = sshll.u32 %s146_s9, 4  ;;  %p99_p0 = scmp.ne.s32.totalorder %s209_s1, %s98_s13  ;;  %s17_s10 = int_to_ptr.vmem [resolvable:$true] %s16_s10 }
   0x3   :  { %p102_p1 = scmp.lt.u32.totalorder %s98_s13, %s209_s1 }
   0x5   :  { %p104_p2 = pnand %p102_p1, %p99_p0 }
   0x7   :  { %107 = shalt.err (!%p104_p2)
}
   0x8   :  { %s108_s18 = scalar_lea.vmem %s17_s10, 1024  ;;  %p113_p4 = scmp.lt.s32.totalorder %s17_s10, %s17_s10 }
   0x9   :  { %p109_p3 = scmp.ne.s32.totalorder %s17_s10, %s108_s18  ;;  %p114_p5 = scmp.lt.s32.totalorder %s108_s18, %s108_s18 }
   0xb   :  { %p115_p6 = por %p114_p5, %p113_p4 }
   0xd   :  { %p116_p7 = pnand %p115_p6, %p109_p3 }
   0xf   :  { %119 = shalt.err (!%p116_p7)
}
  0x10   :  { %s147_s19 = smov 256   ;;  %s148_s20 = smov 16  }
  0x11   :  { %22 = dma.hbm_to_vmem [thread:$0]  %s209_s1, 1024, %s17_s10, [#allocation3], %s147_s19, %s147_s19, %s148_s20  }
  0x12   :  { %142 = dma.done.wait [#allocation3], 1024  }
  0x13   :  { %143 = vsyncadd [#allocation3], 4294966272  ;;  %v149_v0 = vmov 0   ;;  %v28_v1 = vld [vmem:[%s208_s0 + $0x10] sm:$0xff]  ;;  %v26_v2 = vld [vmem:[%s208_s0] sm:$0xff]  ;;  %s150_s30 = smov [#allocation5]  }
  0x14   :  { %97 = vset.pattern.permute.xlu1 %v149_v0  ;;  %96 = vset.pattern.permute.xlu0 %v149_v0  ;;  %v29_v3 = vld [vmem:[%s208_s0 + $0x18] sm:$0xff]  ;;  %v27_v4 = vld [vmem:[%s208_s0 + $0x8] sm:$0xff]  ;;  %v34_v5 = vld [vmem:[#allocation2 + $0x20] sm:$0xff]  ;;  %s79_s3 = sshll.u32 %s150_s30, 4  ;;  %s80_s3 = int_to_ptr.vmem [resolvable:$true] %s79_s3 }
  0x15   :  { %50 = vperm.xlu1 %97, %v28_v1   ;;  %40 = vperm.xlu0 %96, %v26_v2   ;;  %v35_v6 = vld [vmem:[#allocation2 + $0x28] sm:$0xff]  ;;  %v30_v7 = vld [vmem:[#allocation2] sm:$0xff]  ;;  %v36_v15 = vld [vmem:[#allocation2 + $0x30] sm:$0xff]  ;;  %s120_s0 = scalar_lea.vmem %s80_s3, 1024  ;;  %p125_p9 = scmp.lt.s32.totalorder %s80_s3, %s80_s3 }
  0x16   :  { %v31_v8 = vld [vmem:[#allocation2 + $0x8] sm:$0xff]  ;;  %v37_v16 = vld [vmem:[#allocation2 + $0x38] sm:$0xff]  ;;  %v32_v17 = vld [vmem:[#allocation2 + $0x10] sm:$0xff]  ;;  %p121_p8 = scmp.ne.s32.totalorder %s80_s3, %s120_s0  ;;  %p126_p10 = scmp.lt.s32.totalorder %s120_s0, %s120_s0 }
  0x17   :  { %v33_v18 = vld [vmem:[#allocation2 + $0x18] sm:$0xff] }
  0x18   :  { %p127_p11 = por %p126_p10, %p125_p9 }
  0x19   :  { %55 = vperm.xlu1 %97, %v29_v3   ;;  %45 = vperm.xlu0 %96, %v27_v4  }
  0x1a   :  { %p128_p12 = pnand %p127_p11, %p121_p8 }
  0x94   :  { %v51_v9 = vpop.permute.xlu1 %50  ;;  %v41_v10 = vpop.permute.xlu0 %40 }
  0x95   :  { %v62_v11 = vmul.f32 %v51_v9, %v34_v5  ;;  %v63_v12 = vmul.f32 %v51_v9, %v35_v6  ;;  %v58_v13 = vmul.f32 %v41_v10, %v30_v7  ;;  %v59_v14 = vmul.f32 %v41_v10, %v31_v8 }
  0x97   :  { %70 = vst [vmem:[#allocation5 + $0x20] sm:$0xff] %v62_v11  ;;  %71 = vst [vmem:[#allocation5 + $0x28] sm:$0xff] %v63_v12 }
  0x98   :  { %66 = vst [vmem:[#allocation5] sm:$0xff] %v58_v13  ;;  %67 = vst [vmem:[#allocation5 + $0x8] sm:$0xff] %v59_v14  ;;  %v56_v19 = vpop.permute.xlu1 %55  ;;  %v46_v20 = vpop.permute.xlu0 %45 }
  0x99   :  { %v64_v21 = vmul.f32 %v56_v19, %v36_v15  ;;  %v65_v22 = vmul.f32 %v56_v19, %v37_v16  ;;  %v60_v23 = vmul.f32 %v46_v20, %v32_v17  ;;  %v61_v24 = vmul.f32 %v46_v20, %v33_v18 }
  0x9b   :  { %72 = vst [vmem:[#allocation5 + $0x30] sm:$0xff] %v64_v21  ;;  %73 = vst [vmem:[#allocation5 + $0x38] sm:$0xff] %v65_v22 }
  0x9c   :  { %68 = vst [vmem:[#allocation5 + $0x10] sm:$0xff] %v60_v23  ;;  %69 = vst [vmem:[#allocation5 + $0x18] sm:$0xff] %v61_v24 }
  0x9d   :  { %131 = shalt.err (!%p128_p12)
}
  0x9e   :  { %s132_s6 = scalar_lea.hbm %s210_s2, 1024 }
  0x9f   :  { %p133_p13 = scmp.ne.s32.totalorder %s210_s2, %s132_s6  ;;  %p136_p0 = scmp.lt.u32.totalorder %s132_s6, %s210_s2 }
  0xa1   :  { %p138_p1 = pnand %p136_p0, %p133_p13 }
  0xa3   :  { %141 = shalt.err (!%p138_p1)
}
  0xa4   :  { %85 = dma.vmem_to_hbm [thread:$0]  %s80_s3, 1024, %s210_s2, [#allocation4], %s147_s19, %s147_s19, %s148_s20  }
  0xa5   :  { %144 = dma.done.wait [#allocation4], 1024  }
  0xa6   :  { %145 = vsyncadd [#allocation4], 4294966272 }
  0xa7   :  { %89 = vsyncpa [#allocation3], 1 }
  0xa8   :  { %90 = vsyncpa [#allocation4], 1 }

</bundles_post_ra>
